<compile_context>
chip_gen: v5e
topology: v5e:2x2
jax: 0.10.0
libtpu: 0.0.40
codegen_flags: <defaults>
</compile_context>

<pallas_src>
import math
from typing import NamedTuple, Optional

import numpy as np
import jax
import jax.numpy as jnp
from jax.experimental import pallas as pl
from jax.experimental.pallas import tpu as pltpu


class AutoencoderOutput(NamedTuple):
    reconstruction: jax.Array
    latent: jax.Array
    parameters: Optional[dict] = None


_LANE = 128
_SUBLANE = 8
_MAX_TILE_B = 512          # large tiles amortize per-step pipeline overhead (v6e sweep)
_D_TILE_CAP = 2048         # 1-2K feature tiles are plenty for this roofline
_VMEM_BUDGET = 24 << 20    # conservative live-set budget across v5e/v6e/v7x


def _round_up(x, m):
    return ((x + m - 1) // m) * m


def _vmem_limit_bytes(footprint):
    # explicit scoped-VMEM limit: 2x the computed footprint, clamped to stay
    # under v7x's 64 MiB physical capacity and above a sane floor.
    return int(min(64 << 20, max(16 << 20, 2 * footprint)))


# ----------------------------------------------------------------------------
# Encoder kernel: z = relu(x @ We + be), K-tiled over D.
# grid = (batch_tiles, d_tiles); d (reduction) is the last, "arbitrary" axis.
# x arrives f32 and is cast to bf16 in-kernel; accumulation/bias/ReLU are f32.
# ----------------------------------------------------------------------------
def _encoder_kernel(x_ref, we_ref, be_ref, z_ref, acc_ref):
    d = pl.program_id(1)

    @pl.when(d == 0)
    def _():
        acc_ref[...] = jnp.zeros_like(acc_ref)

    x_bf16 = x_ref[...].astype(jnp.bfloat16)                       # (TB, Dt)
    acc_ref[...] += jnp.dot(x_bf16, we_ref[...],
                            preferred_element_type=jnp.float32)    # (TB, LP) f32

    @pl.when(d == pl.num_programs(1) - 1)
    def _():
        z_ref[...] = jnp.maximum(acc_ref[...] + be_ref[...], 0.0).astype(z_ref.dtype)


# ----------------------------------------------------------------------------
# Decoder kernel: r = z @ Wd + bd, N-tiled over D (no accumulation needed).
# ----------------------------------------------------------------------------
def _decoder_kernel(z_ref, wd_ref, bd_ref, r_ref):
    z_bf16 = z_ref[...].astype(jnp.bfloat16)                       # (TB, LP)
    r = jnp.dot(z_bf16, wd_ref[...], preferred_element_type=jnp.float32)
    r_ref[...] = (r + bd_ref[...]).astype(r_ref.dtype)             # (TB, Dt)


def _run_encoder(x_p, we_p, be_p, tile_b, d_tile, true_dims):
    Bp, Dp = x_p.shape
    LP = we_p.shape[1]
    grid = (Bp // tile_b, Dp // d_tile)

    footprint = ((tile_b * d_tile * 4            # x block (f32)
                  + d_tile * LP * 2              # We block (bf16)
                  + LP * 4                       # be
                  + tile_b * LP * 4) * 2         # double-buffered
                 + tile_b * LP * 4)              # f32 accumulator scratch

    B, D, L = true_dims
    cost = pl.CostEstimate(
        flops=int(2 * B * D * L), transcendentals=0,
        bytes_accessed=int(B * D * 4 + D * L * 2 + L * 4 + B * L * 4))

    return pl.pallas_call(
        _encoder_kernel,
        out_shape=jax.ShapeDtypeStruct((Bp, LP), jnp.float32),
        grid=grid,
        in_specs=[
            pl.BlockSpec((tile_b, d_tile), lambda b, d: (b, d)),   # x batch/D tile
            pl.BlockSpec((d_tile, LP), lambda b, d: (d, 0)),       # encoder weight K-tile
            pl.BlockSpec((1, LP), lambda b, d: (0, 0)),            # encoder bias
        ],
        out_specs=pl.BlockSpec((tile_b, LP), lambda b, d: (b, 0)),  # latent (resident acc)
        scratch_shapes=[pltpu.VMEM((tile_b, LP), jnp.float32)],
        compiler_params=pltpu.CompilerParams(
            dimension_semantics=("parallel", "arbitrary"),
            vmem_limit_bytes=_vmem_limit_bytes(footprint)),
        cost_estimate=cost,
    )(x_p, we_p, be_p)


def _run_decoder(z_p, wd_p, bd_p, tile_b, d_tile, recon_dtype, true_dims):
    Bp, LP = z_p.shape
    Dp = wd_p.shape[1]
    grid = (Bp // tile_b, Dp // d_tile)

    recon_item = np.dtype(recon_dtype).itemsize
    footprint = ((tile_b * LP * 4                # z block (f32)
                  + LP * d_tile * 2              # Wd block (bf16)
                  + d_tile * 4                   # bd
                  + tile_b * d_tile * recon_item) * 2)   # double-buffered

    B, D, L = true_dims
    cost = pl.CostEstimate(
        flops=int(2 * B * L * D), transcendentals=0,
        bytes_accessed=int(B * L * 4 + L * D * 2 + D * 4 + B * D * recon_item))

    return pl.pallas_call(
        _decoder_kernel,
        out_shape=jax.ShapeDtypeStruct((Bp, Dp), recon_dtype),
        grid=grid,
        in_specs=[
            pl.BlockSpec((tile_b, LP), lambda b, d: (b, 0)),       # latent
            pl.BlockSpec((LP, d_tile), lambda b, d: (0, d)),       # decoder weight N-tile
            pl.BlockSpec((1, d_tile), lambda b, d: (0, d)),        # decoder bias N-tile
        ],
        out_specs=pl.BlockSpec((tile_b, d_tile), lambda b, d: (b, d)),
        compiler_params=pltpu.CompilerParams(
            dimension_semantics=("parallel", "parallel"),
            vmem_limit_bytes=_vmem_limit_bytes(footprint)),
        cost_estimate=cost,
    )(z_p, wd_p, bd_p)


def prepare_params(params):
    """One-time (hoisted) pad + bf16 cast of the call-invariant weights/biases."""
    we, be, wd, bd = params["we"], params["be"], params["wd"], params["bd"]
    D, L = we.shape
    Dp = _round_up(D, _LANE)
    LP = _round_up(L, _LANE)     # lane-dense latent; never pad beyond 128 to "fill" the MXU
    return {
        "we": jnp.pad(we, ((0, Dp - D), (0, LP - L))).astype(jnp.bfloat16),
        "be": jnp.pad(be.reshape(1, L), ((0, 0), (0, LP - L))).astype(jnp.float32),
        "wd": jnp.pad(wd, ((0, LP - L), (0, Dp - D))).astype(jnp.bfloat16),
        "bd": jnp.pad(bd.reshape(1, D), ((0, 0), (0, Dp - D))).astype(jnp.float32),
    }


def autoencoder_forward(x_nchw, prepared, latent_dim, *,
                        recon_dtype=jnp.float32,
                        d_tile_cap=_D_TILE_CAP,
                        vmem_budget_bytes=_VMEM_BUDGET):
    """x_nchw: (B, C, H, W) float32.  Returns AutoencoderOutput."""
    B = x_nchw.shape[0]
    D = int(math.prod(x_nchw.shape[1:]))
    Dp, LP = prepared["we"].shape
    assert Dp == _round_up(D, _LANE), "prepared params do not match input size"

    # --- tiling: D tile (multiple of 128 dividing Dp), batch tile from VMEM budget ---
    d_tile = min(Dp, _round_up(min(d_tile_cap, Dp), _LANE))
    while Dp % d_tile != 0:
        d_tile -= _LANE

    recon_item = np.dtype(recon_dtype).itemsize
    per_row = (d_tile * 4 * 2                    # x f32 block, double-buffered
               + d_tile * recon_item * 2         # recon block, double-buffered
               + LP * 4 * 5)                     # z in/out (dbl-buf) + acc scratch
    fixed = (d_tile * LP * 2 * 2) * 2 + (LP * 4 + d_tile * 4) * 2
    tile_b_cap = (vmem_budget_bytes - fixed) // max(per_row, 1)
    tile_b_cap = max(_SUBLANE, min(_MAX_TILE_B, (tile_b_cap // _SUBLANE) * _SUBLANE))

    if B <= tile_b_cap:
        tile_b, Bp = B, B                        # block = full batch dim: no row padding
    else:
        tile_b = tile_b_cap
        Bp = _round_up(B, tile_b)

    # --- flatten x; pad only when strictly required (keep f32, cast in-kernel) ---
    x_flat = x_nchw.reshape(B, D)
    if (Bp, Dp) != (B, D):
        x_flat = jnp.pad(x_flat, ((0, Bp - B), (0, Dp - D)))

    true_dims = (B, D, latent_dim)
    latent_p = _run_encoder(x_flat, prepared["we"], prepared["be"],
                            tile_b, d_tile, true_dims)
    recon_p = _run_decoder(latent_p, prepared["wd"], prepared["bd"],
                           tile_b, d_tile, recon_dtype, true_dims)

    recon_flat = recon_p[:B, :D] if (Bp, Dp) != (B, D) else recon_p
    latent = latent_p[:B, :latent_dim]
    reconstruction = recon_flat.reshape(x_nchw.shape)
    return AutoencoderOutput(reconstruction=reconstruction, latent=latent,
                             parameters=None)


def init_params(key, input_size, latent_dim, dtype=jnp.float32):
    """Deterministic init matching torch.nn.Linear default (U(-k, k), k=1/sqrt(fan_in))."""
    k_we, k_be, k_wd, k_bd = jax.random.split(key, 4)
    k_enc = 1.0 / jnp.sqrt(jnp.float32(input_size))
    k_dec = 1.0 / jnp.sqrt(jnp.float32(latent_dim))
    we = jax.random.uniform(k_we, (input_size, latent_dim), dtype, -k_enc, k_enc)
    be = jax.random.uniform(k_be, (1, latent_dim), dtype, -k_enc, k_enc)
    wd = jax.random.uniform(k_wd, (latent_dim, input_size), dtype, -k_dec, k_dec)
    bd = jax.random.uniform(k_bd, (1, input_size), dtype, -k_dec, k_dec)
    return {"we": we, "be": be, "wd": wd, "bd": bd}


if __name__ == "__main__":
    key = jax.random.PRNGKey(0)
    k_x, k_p = jax.random.split(key)

    B, C, H, W = 2, 4, 16, 16          # small NCHW input
    input_size = C * H * W             # 1024
    latent_dim = 32

    x = jax.random.normal(k_x, (B, C, H, W), dtype=jnp.float32)
    params = init_params(k_p, input_size, latent_dim)
    prepared = prepare_params(params)   # pad + bf16 cast once (call-invariant)

    fwd = jax.jit(autoencoder_forward, static_argnames=("latent_dim",))
    out = fwd(x, prepared, latent_dim=latent_dim)
    jax.block_until_ready(out.reconstruction)
    jax.block_until_ready(out.latent)

    # Shape / dtype contract of AutoencoderOutput (default recon dtype = f32)
    assert out.reconstruction.shape == (B, C, H, W)
    assert out.latent.shape == (B, latent_dim)
    assert out.reconstruction.dtype == jnp.float32
    assert out.latent.dtype == jnp.float32

    # Cross-check against a plain-JAX reference using the same precision recipe
    # (bf16 MXU operands, f32 accumulation / bias / ReLU).
    x_flat = x.reshape(B, -1)
    xb = x_flat.astype(jnp.bfloat16)
    web = params["we"].astype(jnp.bfloat16)
    wdb = params["wd"].astype(jnp.bfloat16)
    z_ref = jnp.maximum(
        jnp.dot(xb, web, preferred_element_type=jnp.float32) + params["be"], 0.0)
    r_ref = (jnp.dot(z_ref.astype(jnp.bfloat16), wdb,
                     preferred_element_type=jnp.float32)
             + params["bd"]).reshape(B, C, H, W)
    assert jnp.allclose(out.latent, z_ref, atol=2e-3, rtol=2e-3), \
        float(jnp.max(jnp.abs(out.latent - z_ref)))
    assert jnp.allclose(out.reconstruction, r_ref, atol=2e-3, rtol=2e-3), \
        float(jnp.max(jnp.abs(out.reconstruction - r_ref)))

    print("KERNEL_OK")
</pallas_src>

<mosaic_0001>
module attributes {stable_mosaic.version = 11 : i64} {
  func.func @_encoder_kernel(%arg0: i32, %arg1: i32, %arg2: memref<2x1024xf32, #tpu.memory_space<vmem>>, %arg3: memref<1024x128xbf16, #tpu.memory_space<vmem>>, %arg4: memref<1x128xf32, #tpu.memory_space<vmem>>, %arg5: memref<2x128xf32, #tpu.memory_space<vmem>>, %arg6: memref<2x128xf32, #tpu.memory_space<vmem>>) attributes {dimension_semantics = [#tpu.dimension_semantics<parallel>, #tpu.dimension_semantics<arbitrary>], iteration_bounds = array<i64: 1, 1>, scalar_prefetch = 0 : i64, scratch_operands = 1 : i64, tpu.core_type = #tpu.core_type<tc>, window_params = [{transform_indices = @transform_0, window_bounds = array<i64: 2, 1024>}, {transform_indices = @transform_1, window_bounds = array<i64: 1024, 128>}, {pipeline_mode = #tpu.pipeline_mode<synchronous>, transform_indices = @transform_2, window_bounds = array<i64: 1, 128>}, {transform_indices = @transform_3, window_bounds = array<i64: 2, 128>}]} {
    %c0_i32 = arith.constant 0 : i32
    %0 = arith.cmpi eq, %arg1, %c0_i32 : i32
    %1 = arith.extui %0 : i1 to i32
    %c0_i32_0 = arith.constant 0 : i32
    %2 = arith.cmpi ne, %1, %c0_i32_0 : i32
    scf.if %2 {
      %cst_10 = arith.constant 0.000000e+00 : f32
      %13 = vector.broadcast %cst_10 : f32 to vector<2x128xf32>
      %c0_11 = arith.constant 0 : index
      %c0_12 = arith.constant 0 : index
      %14 = vector.load %arg6[%c0_11, %c0_12] : memref<2x128xf32, #tpu.memory_space<vmem>>, vector<2x128xf32>
      tpu.vector_store %arg6[%c0_11, %c0_12], %13 {strides = array<i32>} : memref<2x128xf32, #tpu.memory_space<vmem>>, vector<2x128xf32>,
    } else {
    }
    %c0 = arith.constant 0 : index
    %c0_1 = arith.constant 0 : index
    %3 = vector.load %arg2[%c0, %c0_1] : memref<2x1024xf32, #tpu.memory_space<vmem>>, vector<2x1024xf32>
    %4 = arith.truncf %3 : vector<2x1024xf32> to vector<2x1024xbf16>
    %c0_2 = arith.constant 0 : index
    %c0_3 = arith.constant 0 : index
    %5 = vector.load %arg6[%c0_2, %c0_3] : memref<2x128xf32, #tpu.memory_space<vmem>>, vector<2x128xf32>
    %c0_4 = arith.constant 0 : index
    %c0_5 = arith.constant 0 : index
    %6 = vector.load %arg3[%c0_4, %c0_5] : memref<1024x128xbf16, #tpu.memory_space<vmem>>, vector<1024x128xbf16>
    %cst = arith.constant dense<0.000000e+00> : vector<2x128xf32>
    %7 = tpu.matmul %4, %6, %cst {dimension_numbers = #tpu.dot_dimension_numbers<[1], [0], [0], [1], [0, 0, 1, 1], [], []>} : vector<2x1024xbf16>, vector<1024x128xbf16>, vector<2x128xf32> -> vector<2x128xf32>
    %8 = arith.addf %5, %7 : vector<2x128xf32>
    %c0_6 = arith.constant 0 : index
    %c0_7 = arith.constant 0 : index
    %9 = vector.load %arg6[%c0_6, %c0_7] : memref<2x128xf32, #tpu.memory_space<vmem>>, vector<2x128xf32>
    tpu.vector_store %arg6[%c0_6, %c0_7], %8 {strides = array<i32>} : memref<2x128xf32, #tpu.memory_space<vmem>>, vector<2x128xf32>,
    %c0_i32_8 = arith.constant 0 : i32
    %10 = arith.cmpi eq, %arg1, %c0_i32_8 : i32
    %11 = arith.extui %10 : i1 to i32
    %c0_i32_9 = arith.constant 0 : i32
    %12 = arith.cmpi ne, %11, %c0_i32_9 : i32
    scf.if %12 {
      %c0_10 = arith.constant 0 : index
      %c0_11 = arith.constant 0 : index
      %13 = vector.load %arg6[%c0_10, %c0_11] : memref<2x128xf32, #tpu.memory_space<vmem>>, vector<2x128xf32>
      %c0_12 = arith.constant 0 : index
      %c0_13 = arith.constant 0 : index
      %14 = vector.load %arg4[%c0_12, %c0_13] : memref<1x128xf32, #tpu.memory_space<vmem>>, vector<1x128xf32>
      %15 = vector.broadcast %14 : vector<1x128xf32> to vector<2x128xf32>
      %16 = arith.addf %13, %15 : vector<2x128xf32>
      %cst_14 = arith.constant 0.000000e+00 : f32
      %17 = vector.broadcast %cst_14 : f32 to vector<2x128xf32>
      %18 = arith.maximumf %16, %17 : vector<2x128xf32>
      %c0_15 = arith.constant 0 : index
      %c0_16 = arith.constant 0 : index
      %19 = vector.load %arg5[%c0_15, %c0_16] : memref<2x128xf32, #tpu.memory_space<vmem>>, vector<2x128xf32>
      tpu.vector_store %arg5[%c0_15, %c0_16], %18 {strides = array<i32>} : memref<2x128xf32, #tpu.memory_space<vmem>>, vector<2x128xf32>,
    } else {
    }
    return
  }
  func.func @transform_0(%arg0: i32, %arg1: i32) -> (i32, i32) {
    %c0_i32 = arith.constant 0 : i32
    return %arg0, %arg1 : i32, i32
  }
  func.func @transform_1(%arg0: i32, %arg1: i32) -> (i32, i32) {
    %c0_i32 = arith.constant 0 : i32
    %c0_i32_0 = arith.constant 0 : i32
    return %arg1, %c0_i32 : i32, i32
  }
  func.func @transform_2(%arg0: i32, %arg1: i32) -> (i32, i32) {
    %c0_i32 = arith.constant 0 : i32
    %c0_i32_0 = arith.constant 0 : i32
    %c0_i32_1 = arith.constant 0 : i32
    return %c0_i32, %c0_i32_0 : i32, i32
  }
  func.func @transform_3(%arg0: i32, %arg1: i32) -> (i32, i32) {
    %c0_i32 = arith.constant 0 : i32
    %c0_i32_0 = arith.constant 0 : i32
    return %arg0, %c0_i32 : i32, i32
  }
}

module attributes {stable_mosaic.version = 11 : i64} {
  func.func @_decoder_kernel(%arg0: i32, %arg1: i32, %arg2: memref<2x128xf32, #tpu.memory_space<vmem>>, %arg3: memref<128x1024xbf16, #tpu.memory_space<vmem>>, %arg4: memref<1x1024xf32, #tpu.memory_space<vmem>>, %arg5: memref<2x1024xf32, #tpu.memory_space<vmem>>) attributes {dimension_semantics = [#tpu.dimension_semantics<parallel>, #tpu.dimension_semantics<parallel>], iteration_bounds = array<i64: 1, 1>, scalar_prefetch = 0 : i64, scratch_operands = 0 : i64, tpu.core_type = #tpu.core_type<tc>, window_params = [{transform_indices = @transform_0, window_bounds = array<i64: 2, 128>}, {transform_indices = @transform_1, window_bounds = array<i64: 128, 1024>}, {transform_indices = @transform_2, window_bounds = array<i64: 1, 1024>}, {transform_indices = @transform_3, window_bounds = array<i64: 2, 1024>}]} {
    %c0 = arith.constant 0 : index
    %c0_0 = arith.constant 0 : index
    %0 = vector.load %arg2[%c0, %c0_0] : memref<2x128xf32, #tpu.memory_space<vmem>>, vector<2x128xf32>
    %1 = arith.truncf %0 : vector<2x128xf32> to vector<2x128xbf16>
    %c0_1 = arith.constant 0 : index
    %c0_2 = arith.constant 0 : index
    %2 = vector.load %arg3[%c0_1, %c0_2] : memref<128x1024xbf16, #tpu.memory_space<vmem>>, vector<128x1024xbf16>
    %cst = arith.constant dense<0.000000e+00> : vector<2x1024xf32>
    %3 = tpu.matmul %1, %2, %cst {dimension_numbers = #tpu.dot_dimension_numbers<[1], [0], [0], [1], [0, 0, 1, 1], [], []>} : vector<2x128xbf16>, vector<128x1024xbf16>, vector<2x1024xf32> -> vector<2x1024xf32>
    %c0_3 = arith.constant 0 : index
    %c0_4 = arith.constant 0 : index
    %4 = vector.load %arg4[%c0_3, %c0_4] : memref<1x1024xf32, #tpu.memory_space<vmem>>, vector<1x1024xf32>
    %5 = vector.broadcast %4 : vector<1x1024xf32> to vector<2x1024xf32>
    %6 = arith.addf %3, %5 : vector<2x1024xf32>
    %c0_5 = arith.constant 0 : index
    %c0_6 = arith.constant 0 : index
    %7 = vector.load %arg5[%c0_5, %c0_6] : memref<2x1024xf32, #tpu.memory_space<vmem>>, vector<2x1024xf32>
    tpu.vector_store %arg5[%c0_5, %c0_6], %6 {strides = array<i32>} : memref<2x1024xf32, #tpu.memory_space<vmem>>, vector<2x1024xf32>,
    return
  }
  func.func @transform_0(%arg0: i32, %arg1: i32) -> (i32, i32) {
    %c0_i32 = arith.constant 0 : i32
    %c0_i32_0 = arith.constant 0 : i32
    return %arg0, %c0_i32 : i32, i32
  }
  func.func @transform_1(%arg0: i32, %arg1: i32) -> (i32, i32) {
    %c0_i32 = arith.constant 0 : i32
    %c0_i32_0 = arith.constant 0 : i32
    return %c0_i32, %arg1 : i32, i32
  }
  func.func @transform_2(%arg0: i32, %arg1: i32) -> (i32, i32) {
    %c0_i32 = arith.constant 0 : i32
    %c0_i32_0 = arith.constant 0 : i32
    return %c0_i32, %arg1 : i32, i32
  }
  func.func @transform_3(%arg0: i32, %arg1: i32) -> (i32, i32) {
    %c0_i32 = arith.constant 0 : i32
    return %arg0, %arg1 : i32, i32
  }
}

</mosaic_0001>

<bundles_post_ra>
// kernel: autoencoder_forward.3
= control target key start
LH: loop header
LB: loop body
LE: loop exit
PB: predicated region body
PF: predicated region fallthrough
CT: control target
= control target key end

     0   :  { %8 = vsyncpa [#allocation3], 0  ;;  %s919_s15 = smov [#allocation2]   ;;  %s920_s17 = smov 512   ;;  %s973_s0 = inlined_call_operand.vmem [shape: f32[2,128], index: 0, kind: input, shape index: {}]   ;;  %s974_s1 = inlined_call_operand.hbm [shape: bf16[128,1024], index: 1, kind: input, shape index: {}]   ;;  %s975_s2 = inlined_call_operand.vmem [shape: f32[1,1024], index: 2, kind: input, shape index: {}]   ;;  %s976_s3 = inlined_call_operand.vmem [shape: f32[2,1024], index: 3, kind: output, shape index: {}]  }
   0x1   :  { %s15_s14 = sshll.u32 %s974_s1, 4  ;;  %s17_s16 = sshll.u32 %s919_s15, 4  ;;  %s16_s14 = int_to_ptr.hbm [resolvable:$true] %s15_s14  ;;  %s18_s16 = int_to_ptr.vmem [resolvable:$true] %s17_s16 }
   0x2   :  { %s921_s18 = smov 32  }
   0x3   :  { %23 = dma.hbm_to_vmem [thread:$0]  %s16_s14, 8192, %s18_s16, [#allocation3], %s920_s17, %s920_s17, %s921_s18  }
   0x4   :  { %917 = dma.done.wait [#allocation3], 8192  }
   0x5   :  { %918 = vsyncadd [#allocation3], 4294959104  ;;  %v796_v0 = vld [vmem:[#allocation2 + $0x1c0] sm:$0xf]  ;;  %v882_v2 = vld [vmem:[#allocation2 + $0x1c4] sm:$0xf] }
   0x6   :  { %v886_v1 = vld [vmem:[#allocation2 + $0x1dc] sm:$0xf0]  ;;  %v798_v4 = vld [vmem:[#allocation2 + $0x1e0] sm:$0xf0]  ;;  %v804_v5 = vld [vmem:[#allocation2 + $0x1c8] sm:$0xf] }
   0x7   :  { %v797_v3 = vor.u32 %v886_v1, %v796_v0  ;;  %v887_v6 = vld [vmem:[#allocation2 + $0x1e4] sm:$0xf0]  ;;  %v801_v7 = vor.u32 %v882_v2, %v798_v4  ;;  %v883_v9 = vld [vmem:[#allocation2 + $0x1cc] sm:$0xf]  ;;  %v764_v11 = vld [vmem:[#allocation2 + $0x180] sm:$0xf] }
   0x8   :  { %v805_v8 = vor.u32 %v887_v6, %v804_v5  ;;  %v806_v10 = vld [vmem:[#allocation2 + $0x1e8] sm:$0xf0]  ;;  %v878_v13 = vld [vmem:[#allocation2 + $0x19c] sm:$0xf0]  ;;  %v874_v14 = vld [vmem:[#allocation2 + $0x184] sm:$0xf] }
   0x9   :  { %434 = vmatpush.bf16.msra.mxu0 %v797_v3  ;;  %v809_v12 = vor.u32 %v883_v9, %v806_v10  ;;  %v766_v15 = vld [vmem:[#allocation2 + $0x1a0] sm:$0xf0]  ;;  %447 = vmatpush.bf16.msra.mxu1 %v801_v7  ;;  %v765_v16 = vor.u32 %v878_v13, %v764_v11  ;;  %v772_v18 = vld [vmem:[#allocation2 + $0x188] sm:$0xf]  ;;  %v875_v20 = vld [vmem:[#allocation2 + $0x18c] sm:$0xf] }
   0xa   :  { %460 = vmatpush.bf16.msra.mxu2 %v805_v8  ;;  %v769_v17 = vor.u32 %v874_v14, %v766_v15  ;;  %v879_v19 = vld [vmem:[#allocation2 + $0x1a4] sm:$0xf0]  ;;  %v774_v22 = vld [vmem:[#allocation2 + $0x1a8] sm:$0xf0]  ;;  %v732_v23 = vld [vmem:[#allocation2 + $0x140] sm:$0xf] }
   0xb   :  { %473 = vmatpush.bf16.msra.mxu3 %v809_v12  ;;  %v773_v21 = vor.u32 %v879_v19, %v772_v18  ;;  %v870_v24 = vld [vmem:[#allocation2 + $0x15c] sm:$0xf0]  ;;  %v777_v25 = vor.u32 %v875_v20, %v774_v22  ;;  %v866_v26 = vld [vmem:[#allocation2 + $0x144] sm:$0xf]  ;;  %v740_v28 = vld [vmem:[#allocation2 + $0x148] sm:$0xf] }
   0xc   :  { %v734_v27 = vld [vmem:[#allocation2 + $0x160] sm:$0xf0]  ;;  %v733_v29 = vor.u32 %v870_v24, %v732_v23  ;;  %v871_v30 = vld [vmem:[#allocation2 + $0x164] sm:$0xf0]  ;;  %v867_v31 = vld [vmem:[#allocation2 + $0x14c] sm:$0xf] }
   0xd   :  { %435 = vmatpush.bf16.msra.mxu0 %v765_v16  ;;  %v742_v32 = vld [vmem:[#allocation2 + $0x168] sm:$0xf0]  ;;  %448 = vmatpush.bf16.msra.mxu1 %v769_v17  ;;  %v737_v33 = vor.u32 %v866_v26, %v734_v27  ;;  %v741_v34 = vor.u32 %v871_v30, %v740_v28  ;;  %v700_v35 = vld [vmem:[#allocation2 + $0x100] sm:$0xf]  ;;  %v858_v37 = vld [vmem:[#allocation2 + $0x104] sm:$0xf] }
   0xe   :  { %461 = vmatpush.bf16.msra.mxu2 %v773_v21  ;;  %v862_v36 = vld [vmem:[#allocation2 + $0x11c] sm:$0xf0]  ;;  %v745_v38 = vor.u32 %v867_v31, %v742_v32  ;;  %v702_v39 = vld [vmem:[#allocation2 + $0x120] sm:$0xf0]  ;;  %v708_v40 = vld [vmem:[#allocation2 + $0x108] sm:$0xf] }
   0xf   :  { %474 = vmatpush.bf16.msra.mxu3 %v777_v25  ;;  %v863_v41 = vld [vmem:[#allocation2 + $0x124] sm:$0xf0]  ;;  %v859_v42 = vld [vmem:[#allocation2 + $0x10c] sm:$0xf]  ;;  %v701_v44 = vor.u32 %v862_v36, %v700_v35  ;;  %v705_v45 = vor.u32 %v858_v37, %v702_v39  ;;  %v668_v47 = vld [vmem:[#allocation2 + $0xc0] sm:$0xf] }
  0x10   :  { %v710_v43 = vld [vmem:[#allocation2 + $0x128] sm:$0xf0]  ;;  %v709_v46 = vor.u32 %v863_v41, %v708_v40  ;;  %v854_v48 = vld [vmem:[#allocation2 + $0xdc] sm:$0xf0]  ;;  %v850_v49 = vld [vmem:[#allocation2 + $0xc4] sm:$0xf] }
  0x11   :  { %436 = vmatpush.bf16.msra.mxu0 %v733_v29  ;;  %449 = vmatpush.bf16.msra.mxu1 %v737_v33  ;;  %v713_v50 = vor.u32 %v859_v42, %v710_v43  ;;  %v670_v51 = vld [vmem:[#allocation2 + $0xe0] sm:$0xf0]  ;;  %v676_v52 = vld [vmem:[#allocation2 + $0xc8] sm:$0xf]  ;;  %v851_v54 = vld [vmem:[#allocation2 + $0xcc] sm:$0xf]  ;;  %v669_v56 = vor.u32 %v854_v48, %v668_v47 }
  0x12   :  { %462 = vmatpush.bf16.msra.mxu2 %v741_v34  ;;  %v855_v53 = vld [vmem:[#allocation2 + $0xe4] sm:$0xf0]  ;;  %v678_v55 = vld [vmem:[#allocation2 + $0xe8] sm:$0xf0]  ;;  %v673_v57 = vor.u32 %v850_v49, %v670_v51  ;;  %v636_v59 = vld [vmem:[#allocation2 + $0x80] sm:$0xf] }
  0x13   :  { %475 = vmatpush.bf16.msra.mxu3 %v745_v38  ;;  %v677_v58 = vor.u32 %v855_v53, %v676_v52  ;;  %v846_v60 = vld [vmem:[#allocation2 + $0x9c] sm:$0xf0]  ;;  %v842_v61 = vld [vmem:[#allocation2 + $0x84] sm:$0xf]  ;;  %v681_v62 = vor.u32 %v851_v54, %v678_v55  ;;  %v644_v0 = vld [vmem:[#allocation2 + $0x88] sm:$0xf] }
  0x14   :  { %v638_v63 = vld [vmem:[#allocation2 + $0xa0] sm:$0xf0]  ;;  %v847_v1 = vld [vmem:[#allocation2 + $0xa4] sm:$0xf0]  ;;  %v843_v2 = vld [vmem:[#allocation2 + $0x8c] sm:$0xf]  ;;  %v637_v4 = vor.u32 %v846_v60, %v636_v59 }
  0x15   :  { %437 = vmatpush.bf16.msra.mxu0 %v701_v44  ;;  %450 = vmatpush.bf16.msra.mxu1 %v705_v45  ;;  %v646_v3 = vld [vmem:[#allocation2 + $0xa8] sm:$0xf0]  ;;  %v641_v5 = vor.u32 %v842_v61, %v638_v63  ;;  %v645_v6 = vor.u32 %v847_v1, %v644_v0  ;;  %v604_v7 = vld [vmem:[#allocation2 + $0x40] sm:$0xf]  ;;  %v834_v9 = vld [vmem:[#allocation2 + $0x44] sm:$0xf] }
  0x16   :  { %463 = vmatpush.bf16.msra.mxu2 %v709_v46  ;;  %v838_v8 = vld [vmem:[#allocation2 + $0x5c] sm:$0xf0]  ;;  %v649_v10 = vor.u32 %v843_v2, %v646_v3  ;;  %v606_v11 = vld [vmem:[#allocation2 + $0x60] sm:$0xf0]  ;;  %v612_v12 = vld [vmem:[#allocation2 + $0x48] sm:$0xf] }
  0x17   :  { %476 = vmatpush.bf16.msra.mxu3 %v713_v50  ;;  %v839_v13 = vld [vmem:[#allocation2 + $0x64] sm:$0xf0]  ;;  %v835_v14 = vld [vmem:[#allocation2 + $0x4c] sm:$0xf]  ;;  %v605_v16 = vor.u32 %v838_v8, %v604_v7  ;;  %v572_v17 = vld [vmem:[#allocation2] sm:$0xf]  ;;  %v609_v19 = vor.u32 %v834_v9, %v606_v11 }
  0x18   :  { %v614_v15 = vld [vmem:[#allocation2 + $0x68] sm:$0xf0]  ;;  %v830_v18 = vld [vmem:[#allocation2 + $0x1c] sm:$0xf0]  ;;  %v613_v20 = vor.u32 %v839_v13, %v612_v12  ;;  %v826_v21 = vld [vmem:[#allocation2 + $0x4] sm:$0xf] }
  0x19   :  { %438 = vmatpush.bf16.msra.mxu0 %v669_v56  ;;  %451 = vmatpush.bf16.msra.mxu1 %v673_v57  ;;  %v574_v22 = vld [vmem:[#allocation2 + $0x20] sm:$0xf0]  ;;  %v580_v23 = vld [vmem:[#allocation2 + $0x8] sm:$0xf]  ;;  %v617_v24 = vor.u32 %v835_v14, %v614_v15  ;;  %v827_v26 = vld [vmem:[#allocation2 + $0xc] sm:$0xf]  ;;  %v573_v31 = vor.u32 %v830_v18, %v572_v17 }
  0x1a   :  { %464 = vmatpush.bf16.msra.mxu2 %v677_v58  ;;  %v831_v25 = vld [vmem:[#allocation2 + $0x24] sm:$0xf0]  ;;  %v582_v27 = vld [vmem:[#allocation2 + $0x28] sm:$0xf0]  ;;  %v812_v28 = vld [vmem:[#allocation2 + $0x1d0] sm:$0xf]  ;;  %v577_v35 = vor.u32 %v826_v21, %v574_v22 }
  0x1b   :  { %477 = vmatpush.bf16.msra.mxu3 %v681_v62  ;;  %v888_v29 = vld [vmem:[#allocation2 + $0x1ec] sm:$0xf0]  ;;  %v884_v30 = vld [vmem:[#allocation2 + $0x1d4] sm:$0xf]  ;;  %v820_v33 = vld [vmem:[#allocation2 + $0x1d8] sm:$0xf]  ;;  %v581_v36 = vor.u32 %v831_v25, %v580_v23  ;;  %v585_v40 = vor.u32 %v827_v26, %v582_v27 }
  0x1c   :  { %v814_v32 = vld [vmem:[#allocation2 + $0x1f0] sm:$0xf0]  ;;  %v889_v34 = vld [vmem:[#allocation2 + $0x1f4] sm:$0xf0]  ;;  %v885_v37 = vld [vmem:[#allocation2 + $0x1dc] sm:$0xf]  ;;  %v813_v41 = vor.u32 %v888_v29, %v812_v28 }
  0x1d   :  { %439 = vmatpush.bf16.msra.mxu0 %v637_v4  ;;  %452 = vmatpush.bf16.msra.mxu1 %v641_v5  ;;  %v822_v38 = vld [vmem:[#allocation2 + $0x1f8] sm:$0xf0]  ;;  %v30_v39 = vld [vmem:[%s973_s0] sm:$0x3]  ;;  %v817_v42 = vor.u32 %v884_v30, %v814_v32  ;;  %v821_v43 = vor.u32 %v889_v34, %v820_v33  ;;  %v780_v44 = vld [vmem:[#allocation2 + $0x190] sm:$0xf] }
  0x1e   :  { %465 = vmatpush.bf16.msra.mxu2 %v645_v6  ;;  %v880_v45 = vld [vmem:[#allocation2 + $0x1ac] sm:$0xf0]  ;;  %v876_v46 = vld [vmem:[#allocation2 + $0x194] sm:$0xf]  ;;  %v825_v47 = vor.u32 %v885_v37, %v822_v38  ;;  %v788_v49 = vld [vmem:[#allocation2 + $0x198] sm:$0xf]  ;;  %v948_v51 = vpack.c.bf16 %v30_v39, %v30_v39 }
  0x1f   :  { %478 = vmatpush.bf16.msra.mxu3 %v649_v10  ;;  %v782_v48 = vld [vmem:[#allocation2 + $0x1b0] sm:$0xf0]  ;;  %v881_v50 = vld [vmem:[#allocation2 + $0x1b4] sm:$0xf0]  ;;  %v877_v52 = vld [vmem:[#allocation2 + $0x19c] sm:$0xf]  ;;  %v781_v54 = vor.u32 %v880_v45, %v780_v44 }
  0x20   :  { %v790_v53 = vld [vmem:[#allocation2 + $0x1b8] sm:$0xf0]  ;;  %v785_v55 = vor.u32 %v876_v46, %v782_v48  ;;  %v789_v56 = vor.u32 %v881_v50, %v788_v49  ;;  %v748_v57 = vld [vmem:[#allocation2 + $0x150] sm:$0xf]  ;;  %v868_v59 = vld [vmem:[#allocation2 + $0x154] sm:$0xf] }
  0x21   :  { %440 = vmatpush.bf16.msra.mxu0 %v605_v16  ;;  %453 = vmatpush.bf16.msra.mxu1 %v609_v19  ;;  %v872_v58 = vld [vmem:[#allocation2 + $0x16c] sm:$0xf0]  ;;  %v793_v60 = vor.u32 %v877_v52, %v790_v53  ;;  %v750_v61 = vld [vmem:[#allocation2 + $0x170] sm:$0xf0]  ;;  %v756_v62 = vld [vmem:[#allocation2 + $0x158] sm:$0xf] }
  0x22   :  { %466 = vmatpush.bf16.msra.mxu2 %v613_v20  ;;  %v873_v63 = vld [vmem:[#allocation2 + $0x174] sm:$0xf0]  ;;  %v869_v0 = vld [vmem:[#allocation2 + $0x15c] sm:$0xf]  ;;  %v749_v2 = vor.u32 %v872_v58, %v748_v57  ;;  %v753_v3 = vor.u32 %v868_v59, %v750_v61  ;;  %v716_v5 = vld [vmem:[#allocation2 + $0x110] sm:$0xf] }
  0x23   :  { %479 = vmatpush.bf16.msra.mxu3 %v617_v24  ;;  %v758_v1 = vld [vmem:[#allocation2 + $0x178] sm:$0xf0]  ;;  %v757_v4 = vor.u32 %v873_v63, %v756_v62  ;;  %v864_v6 = vld [vmem:[#allocation2 + $0x12c] sm:$0xf0]  ;;  %v860_v7 = vld [vmem:[#allocation2 + $0x114] sm:$0xf] }
  0x24   :  { %v761_v8 = vor.u32 %v869_v0, %v758_v1  ;;  %v718_v9 = vld [vmem:[#allocation2 + $0x130] sm:$0xf0]  ;;  %v724_v10 = vld [vmem:[#allocation2 + $0x118] sm:$0xf]  ;;  %v861_v12 = vld [vmem:[#allocation2 + $0x11c] sm:$0xf]  ;;  %v717_v14 = vor.u32 %v864_v6, %v716_v5 }
  0x25   :  { %441 = vmatpush.bf16.msra.mxu0 %v573_v31  ;;  %454 = vmatpush.bf16.msra.mxu1 %v577_v35  ;;  %v865_v11 = vld [vmem:[#allocation2 + $0x134] sm:$0xf0]  ;;  %v726_v13 = vld [vmem:[#allocation2 + $0x138] sm:$0xf0]  ;;  %v721_v15 = vor.u32 %v860_v7, %v718_v9  ;;  %v684_v17 = vld [vmem:[#allocation2 + $0xd0] sm:$0xf] }
  0x26   :  { %467 = vmatpush.bf16.msra.mxu2 %v581_v36  ;;  %v725_v16 = vor.u32 %v865_v11, %v724_v10  ;;  %v856_v18 = vld [vmem:[#allocation2 + $0xec] sm:$0xf0]  ;;  %v852_v19 = vld [vmem:[#allocation2 + $0xd4] sm:$0xf]  ;;  %v729_v20 = vor.u32 %v861_v12, %v726_v13  ;;  %v692_v22 = vld [vmem:[#allocation2 + $0xd8] sm:$0xf] }
  0x27   :  { %480 = vmatpush.bf16.msra.mxu3 %v585_v40  ;;  %v686_v21 = vld [vmem:[#allocation2 + $0xf0] sm:$0xf0]  ;;  %v857_v23 = vld [vmem:[#allocation2 + $0xf4] sm:$0xf0]  ;;  %v853_v24 = vld [vmem:[#allocation2 + $0xdc] sm:$0xf]  ;;  %v685_v26 = vor.u32 %v856_v18, %v684_v17 }
  0x28   :  { %442 = vmatmul.bf16.vlgmr.msra.gmra.mxu0 %v948_v51  ;;  %455 = vmatmul.bf16.vlgmr.msra.gmra.mxu1 %v948_v51  ;;  %v694_v25 = vld [vmem:[#allocation2 + $0xf8] sm:$0xf0]  ;;  %v689_v27 = vor.u32 %v852_v19, %v686_v21  ;;  %v693_v28 = vor.u32 %v857_v23, %v692_v22  ;;  %v652_v29 = vld [vmem:[#allocation2 + $0x90] sm:$0xf]  ;;  %v844_v31 = vld [vmem:[#allocation2 + $0x94] sm:$0xf] }
  0x29   :  { %486 = vmatpush.bf16.msrb.mxu0 %v813_v41  ;;  %499 = vmatpush.bf16.msrb.mxu1 %v817_v42  ;;  %v848_v30 = vld [vmem:[#allocation2 + $0xac] sm:$0xf0]  ;;  %v697_v32 = vor.u32 %v853_v24, %v694_v25  ;;  %v654_v33 = vld [vmem:[#allocation2 + $0xb0] sm:$0xf0]  ;;  %v660_v34 = vld [vmem:[#allocation2 + $0x98] sm:$0xf] }
  0x2a   :  { %512 = vmatpush.bf16.msrb.mxu2 %v821_v43  ;;  %481 = vmatmul.bf16.vlgmr.msra.gmra.mxu3 %v948_v51  ;;  %v849_v35 = vld [vmem:[#allocation2 + $0xb4] sm:$0xf0]  ;;  %v845_v36 = vld [vmem:[#allocation2 + $0x9c] sm:$0xf]  ;;  %v653_v38 = vor.u32 %v848_v30, %v652_v29  ;;  %v657_v39 = vor.u32 %v844_v31, %v654_v33  ;;  %v620_v41 = vld [vmem:[#allocation2 + $0x50] sm:$0xf] }
  0x2b   :  { %525 = vmatpush.bf16.msrb.mxu3 %v825_v47  ;;  %468 = vmatmul.bf16.vlgmr.msra.gmra.mxu2 %v948_v51  ;;  %v662_v37 = vld [vmem:[#allocation2 + $0xb8] sm:$0xf0]  ;;  %v661_v40 = vor.u32 %v849_v35, %v660_v34  ;;  %v840_v42 = vld [vmem:[#allocation2 + $0x6c] sm:$0xf0]  ;;  %v836_v43 = vld [vmem:[#allocation2 + $0x54] sm:$0xf] }
  0x2c   :  { %v665_v44 = vor.u32 %v845_v36, %v662_v37  ;;  %v622_v45 = vld [vmem:[#allocation2 + $0x70] sm:$0xf0]  ;;  %v628_v46 = vld [vmem:[#allocation2 + $0x58] sm:$0xf]  ;;  %v837_v48 = vld [vmem:[#allocation2 + $0x5c] sm:$0xf]  ;;  %v621_v50 = vor.u32 %v840_v42, %v620_v41 }
  0x2d   :  { %487 = vmatpush.bf16.msrb.mxu0 %v781_v54  ;;  %500 = vmatpush.bf16.msrb.mxu1 %v785_v55  ;;  %v841_v47 = vld [vmem:[#allocation2 + $0x74] sm:$0xf0]  ;;  %v630_v49 = vld [vmem:[#allocation2 + $0x78] sm:$0xf0]  ;;  %v625_v52 = vor.u32 %v836_v43, %v622_v45  ;;  %v588_v54 = vld [vmem:[#allocation2 + $0x10] sm:$0xf] }
  0x2e   :  { %513 = vmatpush.bf16.msrb.mxu2 %v789_v56  ;;  %v629_v53 = vor.u32 %v841_v47, %v628_v46  ;;  %v832_v55 = vld [vmem:[#allocation2 + $0x2c] sm:$0xf0]  ;;  %v828_v56 = vld [vmem:[#allocation2 + $0x14] sm:$0xf]  ;;  %v633_v57 = vor.u32 %v837_v48, %v630_v49  ;;  %v596_v59 = vld [vmem:[#allocation2 + $0x18] sm:$0xf] }
  0x2f   :  { %526 = vmatpush.bf16.msrb.mxu3 %v793_v60  ;;  %v590_v58 = vld [vmem:[#allocation2 + $0x30] sm:$0xf0]  ;;  %v833_v60 = vld [vmem:[#allocation2 + $0x34] sm:$0xf0]  ;;  %v829_v61 = vld [vmem:[#allocation2 + $0x1c] sm:$0xf]  ;;  %v589_v63 = vor.u32 %v832_v55, %v588_v54 }
  0x30   :  { %v598_v62 = vld [vmem:[#allocation2 + $0x38] sm:$0xf0]  ;;  %v593_v0 = vor.u32 %v828_v56, %v590_v58  ;;  %v597_v1 = vor.u32 %v833_v60, %v596_v59  ;;  %vm552_vm0 = vcmask 1041408   ;;  %vm554_vm1 = vcmask 1045508  }
  0x31   :  { %488 = vmatpush.bf16.msrb.mxu0 %v749_v2  ;;  %501 = vmatpush.bf16.msrb.mxu1 %v753_v3  ;;  %v601_v2 = vor.u32 %v829_v61, %v598_v62  ;;  %v96_v3 = vld [vmem:[%s975_s2] sm:$0xff]  ;;  %vm556_vm2 = vcmask 1043456  }
  0x32   :  { %514 = vmatpush.bf16.msrb.mxu2 %v757_v4  ;;  %v99_v4 = vperm.slane %v96_v3, 1  ;;  %v98_v6 = vperm.slane %v96_v3, 0  ;;  %v100_v9 = vperm.slane %v96_v3, 2  ;;  %v101_v10 = vperm.slane %v96_v3, 3 }
  0x33   :  { %527 = vmatpush.bf16.msrb.mxu3 %v761_v8  ;;  %v102_v29 = vperm.slane %v96_v3, 4  ;;  %v105_v31 = vperm.slane %v96_v3, 7 }
  0x35   :  { %489 = vmatpush.bf16.msrb.mxu0 %v717_v14  ;;  %502 = vmatpush.bf16.msrb.mxu1 %v721_v15 }
  0x36   :  { %515 = vmatpush.bf16.msrb.mxu2 %v725_v16 }
  0x37   :  { %528 = vmatpush.bf16.msrb.mxu3 %v729_v20 }
  0x39   :  { %490 = vmatpush.bf16.msrb.mxu0 %v685_v26  ;;  %503 = vmatpush.bf16.msrb.mxu1 %v689_v27  ;;  %v103_v26 = vperm.slane %v96_v3, 5 }
  0x3a   :  { %516 = vmatpush.bf16.msrb.mxu2 %v693_v28  ;;  %v104_v28 = vperm.slane %v96_v3, 6 }
  0x3b   :  { %529 = vmatpush.bf16.msrb.mxu3 %v697_v32 }
  0x3d   :  { %491 = vmatpush.bf16.msrb.mxu0 %v653_v38  ;;  %504 = vmatpush.bf16.msrb.mxu1 %v657_v39 }
  0x3e   :  { %517 = vmatpush.bf16.msrb.mxu2 %v661_v40 }
  0x3f   :  { %530 = vmatpush.bf16.msrb.mxu3 %v665_v44 }
  0x41   :  { %492 = vmatpush.bf16.msrb.mxu0 %v621_v50  ;;  %505 = vmatpush.bf16.msrb.mxu1 %v625_v52 }
  0x42   :  { %518 = vmatpush.bf16.msrb.mxu2 %v629_v53 }
  0x43   :  { %531 = vmatpush.bf16.msrb.mxu3 %v633_v57 }
  0x45   :  { %493 = vmatpush.bf16.msrb.mxu0 %v589_v63  ;;  %506 = vmatpush.bf16.msrb.mxu1 %v593_v0 }
  0x46   :  { %519 = vmatpush.bf16.msrb.mxu2 %v597_v1 }
  0x47   :  { %532 = vmatpush.bf16.msrb.mxu3 %v601_v2 }
  0x48   :  { %494 = vmatmul.bf16.vlgmr.msrb.gmra.mxu0 %v948_v51  ;;  %507 = vmatmul.bf16.vlgmr.msrb.gmra.mxu1 %v948_v51 }
  0x49   :  { %520 = vmatmul.bf16.vlgmr.msrb.gmra.mxu2 %v948_v51 }
  0x4a   :  { %533 = vmatmul.bf16.vlgmr.msrb.gmra.mxu3 %v948_v51 }
  0xa5   :  { %v443_v5 = vpop.f32.mrf.mxu0  ;;  %v456_v7 = vpop.f32.mrf.mxu1 }
  0xa6   :  { %v457_v8 = vadd.f32 %v456_v7, %v99_v4  ;;  %v444_v11 = vadd.f32 %v443_v5, %v98_v6 }
  0xa8   :  { %v546_v12 = vrot.slane %v457_v8, 6 }
  0xaa   :  { %v553_v18 = vsel %vm552_vm0, %v444_v11, %v546_v12 }
  0xad   :  { %v482_v15 = vpop.f32.mrf.mxu3  ;;  %v445_v51 = vpop.f32.mrf.mxu0 }
  0xae   :  { %v469_v13 = vpop.f32.mrf.mxu2  ;;  %v483_v16 = vadd.f32 %v482_v15, %v101_v10  ;;  %v458_v20 = vpop.f32.mrf.mxu1 }
  0xaf   :  { %v470_v14 = vadd.f32 %v469_v13, %v100_v9 }
  0xb0   :  { %v548_v19 = vrot.slane %v483_v16, 2 }
  0xb1   :  { %v547_v17 = vrot.slane %v470_v14, 4 }
  0xb3   :  { %v555_v21 = vsel %vm554_vm1, %v547_v17, %v548_v19 }
  0xb4   :  { %v557_v22 = vsel %vm556_vm2, %v553_v18, %v555_v21 }
  0xb5   :  { %563 = vst [vmem:[%s976_s3] sm:$0xff] %v557_v22  ;;  %v484_v24 = vpop.f32.mrf.mxu3 }
  0xb6   :  { %v471_v23 = vpop.f32.mrf.mxu2 }
  0xc5   :  { %v495_v25 = vpop.f32.mrf.mxu0  ;;  %v508_v27 = vpop.f32.mrf.mxu1 }
  0xc6   :  { %v509_v30 = vadd.f32 %v508_v27, %v103_v26  ;;  %v496_v36 = vadd.f32 %v495_v25, %v102_v29 }
  0xc8   :  { %v549_v37 = vrot.slane %v509_v30, 6 }
  0xca   :  { %v558_v42 = vsel %vm552_vm0, %v496_v36, %v549_v37 }
  0xcc   :  { %v521_v32 = vpop.f32.mrf.mxu2 }
  0xcd   :  { %v522_v33 = vadd.f32 %v521_v32, %v104_v28  ;;  %v534_v34 = vpop.f32.mrf.mxu3  ;;  %v497_v35 = vpop.f32.mrf.mxu0 }
  0xce   :  { %v535_v38 = vadd.f32 %v534_v34, %v105_v31  ;;  %v510_v39 = vpop.f32.mrf.mxu1 }
  0xcf   :  { %v550_v40 = vrot.slane %v522_v33, 4 }
  0xd0   :  { %v551_v41 = vrot.slane %v535_v38, 2 }
  0xd2   :  { %v559_v43 = vsel %vm554_vm1, %v550_v40, %v551_v41 }
  0xd3   :  { %v560_v44 = vsel %vm556_vm2, %v558_v42, %v559_v43 }
  0xd4   :  { %564 = vst [vmem:[%s976_s3 + $0x8] sm:$0xff] %v560_v44  ;;  %v523_v45 = vpop.f32.mrf.mxu2 }
  0xd5   :  { %v536_v46 = vpop.f32.mrf.mxu3 }
  0xd6   :  { %569 = vsyncpa [#allocation3], 1 }

// kernel: autoencoder_forward.2
= control target key start
LH: loop header
LB: loop body
LE: loop exit
PB: predicated region body
PF: predicated region fallthrough
CT: control target
= control target key end

     0   :  { %8 = vsyncpa [#allocation4], 0  ;;  %s1052_s15 = smov [#allocation3]   ;;  %s1053_s17 = smov 64   ;;  %s1091_s0 = inlined_call_operand.vmem [shape: f32[2,1024], index: 0, kind: input, shape index: {}]   ;;  %s1092_s1 = inlined_call_operand.hbm [shape: bf16[1024,128], index: 1, kind: input, shape index: {}]   ;;  %s1093_s2 = inlined_call_operand.vmem [shape: f32[1,128], index: 2, kind: input, shape index: {}]   ;;  %s1094_s3 = inlined_call_operand.vmem [shape: f32[2,128], index: 3, kind: output, shape index: {}]  }
   0x1   :  { %s15_s14 = sshll.u32 %s1092_s1, 4  ;;  %s17_s16 = sshll.u32 %s1052_s15, 4  ;;  %s16_s14 = int_to_ptr.hbm [resolvable:$true] %s15_s14  ;;  %s18_s16 = int_to_ptr.vmem [resolvable:$true] %s17_s16 }
   0x2   :  { %s1054_s18 = smov 4  }
   0x3   :  { %23 = dma.hbm_to_vmem [thread:$0]  %s16_s14, 8192, %s18_s16, [#allocation4], %s1053_s17, %s1053_s17, %s1054_s18  }
   0x4   :  { %1050 = dma.done.wait [#allocation4], 8192  }
   0x5   :  { %1051 = vsyncadd [#allocation4], 4294959104  ;;  %v964_v0 = vld [vmem:[#allocation3 + $0x38] sm:$0xff]  ;;  %v963_v4 = vld [vmem:[#allocation3 + $0x30] sm:$0xff] }
   0x6   :  { %v972_v1 = vld [vmem:[#allocation3 + $0x78] sm:$0xff]  ;;  %579 = vmatpush.bf16.msra.mxu0 %v964_v0  ;;  %v971_v5 = vld [vmem:[#allocation3 + $0x70] sm:$0xff]  ;;  %v962_v8 = vld [vmem:[#allocation3 + $0x28] sm:$0xff] }
   0x7   :  { %v980_v2 = vld [vmem:[#allocation3 + $0xb8] sm:$0xff]  ;;  %592 = vmatpush.bf16.msra.mxu1 %v972_v1  ;;  %v979_v6 = vld [vmem:[#allocation3 + $0xb0] sm:$0xff]  ;;  %v970_v9 = vld [vmem:[#allocation3 + $0x68] sm:$0xff] }
   0x8   :  { %v988_v3 = vld [vmem:[#allocation3 + $0xf8] sm:$0xff]  ;;  %605 = vmatpush.bf16.msra.mxu2 %v980_v2  ;;  %v987_v7 = vld [vmem:[#allocation3 + $0xf0] sm:$0xff]  ;;  %v978_v10 = vld [vmem:[#allocation3 + $0xa8] sm:$0xff] }
   0x9   :  { %618 = vmatpush.bf16.msra.mxu3 %v988_v3  ;;  %v986_v11 = vld [vmem:[#allocation3 + $0xe8] sm:$0xff]  ;;  %v961_v12 = vld [vmem:[#allocation3 + $0x20] sm:$0xff]  ;;  %v35_v16 = vld [vmem:[%s1091_s0] sm:$0xff] }
   0xa   :  { %580 = vmatpush.bf16.msra.mxu0 %v963_v4  ;;  %v969_v13 = vld [vmem:[#allocation3 + $0x60] sm:$0xff]  ;;  %v960_v17 = vld [vmem:[#allocation3 + $0x18] sm:$0xff]  ;;  %39 = vst [vmem:[#allocation1] ss:$4 sm:$0xff] %v35_v16  ;;  %v959_v21 = vld [vmem:[#allocation3 + $0x10] sm:$0xff] }
   0xb   :  { %593 = vmatpush.bf16.msra.mxu1 %v971_v5  ;;  %v977_v14 = vld [vmem:[#allocation3 + $0xa0] sm:$0xff]  ;;  %v968_v18 = vld [vmem:[#allocation3 + $0x58] sm:$0xff]  ;;  %v967_v22 = vld [vmem:[#allocation3 + $0x50] sm:$0xff] }
   0xc   :  { %606 = vmatpush.bf16.msra.mxu2 %v979_v6  ;;  %v985_v15 = vld [vmem:[#allocation3 + $0xe0] sm:$0xff]  ;;  %v976_v19 = vld [vmem:[#allocation3 + $0x98] sm:$0xff]  ;;  %v975_v23 = vld [vmem:[#allocation3 + $0x90] sm:$0xff] }
   0xd   :  { %619 = vmatpush.bf16.msra.mxu3 %v987_v7  ;;  %v984_v20 = vld [vmem:[#allocation3 + $0xd8] sm:$0xff]  ;;  %v983_v24 = vld [vmem:[#allocation3 + $0xd0] sm:$0xff]  ;;  %v958_v25 = vld [vmem:[#allocation3 + $0x8] sm:$0xff] }
   0xe   :  { %581 = vmatpush.bf16.msra.mxu0 %v962_v8  ;;  %v966_v26 = vld [vmem:[#allocation3 + $0x48] sm:$0xff]  ;;  %v36_v29 = vld [vmem:[%s1091_s0 + $0x8] sm:$0xff]  ;;  %v995_v46 = vld [vmem:[#allocation3 + $0x130] sm:$0xff] }
   0xf   :  { %594 = vmatpush.bf16.msra.mxu1 %v970_v9  ;;  %v974_v27 = vld [vmem:[#allocation3 + $0x88] sm:$0xff]  ;;  %v957_v30 = vld [vmem:[#allocation3] sm:$0xff]  ;;  %41 = vst [vmem:[#allocation1 + $0x20] ss:$4 sm:$0xff] %v36_v29  ;;  %v996_v34 = vld [vmem:[#allocation3 + $0x138] sm:$0xff] }
  0x10   :  { %607 = vmatpush.bf16.msra.mxu2 %v978_v10  ;;  %v982_v28 = vld [vmem:[#allocation3 + $0xc8] sm:$0xff]  ;;  %v965_v31 = vld [vmem:[#allocation3 + $0x40] sm:$0xff]  ;;  %v1004_v35 = vld [vmem:[#allocation3 + $0x178] sm:$0xff] }
  0x11   :  { %620 = vmatpush.bf16.msra.mxu3 %v986_v11  ;;  %v973_v32 = vld [vmem:[#allocation3 + $0x80] sm:$0xff]  ;;  %v42_v37 = vld.sshfl [vmem:[#allocation1] sm:$0xff pattern:$0x73625140]  ;;  %v994_v50 = vld [vmem:[#allocation3 + $0x128] sm:$0xff] }
  0x12   :  { %582 = vmatpush.bf16.msra.mxu0 %v961_v12  ;;  %v981_v33 = vld [vmem:[#allocation3 + $0xc0] sm:$0xff]  ;;  %v45_v38 = vld.sshfl [vmem:[#allocation1 + $0x18] sm:$0xff pattern:$0x73625140]  ;;  %v1012_v40 = vld [vmem:[#allocation3 + $0x1b8] sm:$0xff]  ;;  %v58_v43 = vpack.c.bf16 %v42_v37, %v42_v37 }
  0x13   :  { %595 = vmatpush.bf16.msra.mxu1 %v969_v13  ;;  %v44_v36 = vld.sshfl [vmem:[#allocation1 + $0x10] sm:$0xff pattern:$0x73625140]  ;;  %v43_v39 = vld.sshfl [vmem:[#allocation1 + $0x8] sm:$0xff pattern:$0x73625140]  ;;  %v61_v44 = vpack.c.bf16 %v45_v38, %v45_v38 }
  0x14   :  { %608 = vmatpush.bf16.msra.mxu2 %v977_v14  ;;  %v1020_v41 = vld [vmem:[#allocation3 + $0x1f8] sm:$0xff]  ;;  %v60_v42 = vpack.c.bf16 %v44_v36, %v44_v36  ;;  %v59_v45 = vpack.c.bf16 %v43_v39, %v43_v39  ;;  %v1003_v47 = vld [vmem:[#allocation3 + $0x170] sm:$0xff]  ;;  %v1002_v51 = vld [vmem:[#allocation3 + $0x168] sm:$0xff] }
  0x15   :  { %621 = vmatpush.bf16.msra.mxu3 %v985_v15  ;;  %v1011_v48 = vld [vmem:[#allocation3 + $0x1b0] sm:$0xff]  ;;  %v1010_v52 = vld [vmem:[#allocation3 + $0x1a8] sm:$0xff]  ;;  %v993_v54 = vld [vmem:[#allocation3 + $0x120] sm:$0xff] }
  0x16   :  { %583 = vmatpush.bf16.msra.mxu0 %v960_v17  ;;  %v1019_v49 = vld [vmem:[#allocation3 + $0x1f0] sm:$0xff]  ;;  %v1018_v53 = vld [vmem:[#allocation3 + $0x1e8] sm:$0xff]  ;;  %v1001_v55 = vld [vmem:[#allocation3 + $0x160] sm:$0xff] }
  0x17   :  { %596 = vmatpush.bf16.msra.mxu1 %v968_v18  ;;  %v1009_v56 = vld [vmem:[#allocation3 + $0x1a0] sm:$0xff]  ;;  %v992_v58 = vld [vmem:[#allocation3 + $0x118] sm:$0xff]  ;;  %v991_v62 = vld [vmem:[#allocation3 + $0x110] sm:$0xff] }
  0x18   :  { %609 = vmatpush.bf16.msra.mxu2 %v976_v19  ;;  %v1017_v57 = vld [vmem:[#allocation3 + $0x1e0] sm:$0xff]  ;;  %v1000_v59 = vld [vmem:[#allocation3 + $0x158] sm:$0xff]  ;;  %v999_v63 = vld [vmem:[#allocation3 + $0x150] sm:$0xff] }
  0x19   :  { %622 = vmatpush.bf16.msra.mxu3 %v984_v20  ;;  %v1008_v60 = vld [vmem:[#allocation3 + $0x198] sm:$0xff]  ;;  %v1007_v0 = vld [vmem:[#allocation3 + $0x190] sm:$0xff]  ;;  %v990_v2 = vld [vmem:[#allocation3 + $0x108] sm:$0xff]  ;;  %v1055_v20 = vmov 0.0  }
  0x1a   :  { %584 = vmatpush.bf16.msra.mxu0 %v959_v21  ;;  %v1016_v61 = vld [vmem:[#allocation3 + $0x1d8] sm:$0xff]  ;;  %v1015_v1 = vld [vmem:[#allocation3 + $0x1d0] sm:$0xff]  ;;  %v998_v3 = vld [vmem:[#allocation3 + $0x148] sm:$0xff]  ;;  %34 = vst [vmem:[#allocation2] sm:$0x3] %v1055_v20 }
  0x1b   :  { %597 = vmatpush.bf16.msra.mxu1 %v967_v22  ;;  %v1006_v4 = vld [vmem:[#allocation3 + $0x188] sm:$0xff]  ;;  %v989_v6 = vld [vmem:[#allocation3 + $0x100] sm:$0xff]  ;;  %v46_v10 = vld.sshfl [vmem:[#allocation1 + $0x20] sm:$0xff pattern:$0x73625140] }
  0x1c   :  { %610 = vmatpush.bf16.msra.mxu2 %v975_v23  ;;  %v1014_v5 = vld [vmem:[#allocation3 + $0x1c8] sm:$0xff]  ;;  %v997_v7 = vld [vmem:[#allocation3 + $0x140] sm:$0xff]  ;;  %v62_v14 = vpack.c.bf16 %v46_v10, %v46_v10 }
  0x1d   :  { %623 = vmatpush.bf16.msra.mxu3 %v983_v24  ;;  %v1005_v8 = vld [vmem:[#allocation3 + $0x180] sm:$0xff]  ;;  %v49_v13 = vld.sshfl [vmem:[#allocation1 + $0x38] sm:$0xff pattern:$0x73625140] }
  0x1e   :  { %585 = vmatpush.bf16.msra.mxu0 %v958_v25  ;;  %v1013_v9 = vld [vmem:[#allocation3 + $0x1c0] sm:$0xff]  ;;  %v65_v17 = vpack.c.bf16 %v49_v13, %v49_v13 }
  0x1f   :  { %598 = vmatpush.bf16.msra.mxu1 %v966_v26  ;;  %v47_v11 = vld.sshfl [vmem:[#allocation1 + $0x28] sm:$0xff pattern:$0x73625140]  ;;  %v48_v12 = vld.sshfl [vmem:[#allocation1 + $0x30] sm:$0xff pattern:$0x73625140] }
  0x20   :  { %611 = vmatpush.bf16.msra.mxu2 %v974_v27  ;;  %v63_v15 = vpack.c.bf16 %v47_v11, %v47_v11  ;;  %v64_v16 = vpack.c.bf16 %v48_v12, %v48_v12 }
  0x21   :  { %624 = vmatpush.bf16.msra.mxu3 %v982_v28  ;;  %v66_v39 = vld [vmem:[#allocation2] sm:$0x3] }
  0x22   :  { %586 = vmatpush.bf16.msra.mxu0 %v957_v30 }
  0x23   :  { %599 = vmatpush.bf16.msra.mxu1 %v965_v31 }
  0x24   :  { %612 = vmatpush.bf16.msra.mxu2 %v973_v32 }
  0x25   :  { %625 = vmatpush.bf16.msra.mxu3 %v981_v33  ;;  %587 = vmatmul.bf16.vlgmr.msra.gmra.mxu0 %v58_v43 }
  0x26   :  { %631 = vmatpush.bf16.msrb.mxu0 %v996_v34  ;;  %600 = vmatmul.bf16.vlgmr.msra.gmra.mxu1 %v59_v45 }
  0x27   :  { %644 = vmatpush.bf16.msrb.mxu1 %v1004_v35  ;;  %613 = vmatmul.bf16.vlgmr.msra.gmra.mxu2 %v60_v42 }
  0x28   :  { %657 = vmatpush.bf16.msrb.mxu2 %v1012_v40  ;;  %626 = vmatmul.bf16.vlgmr.msra.gmra.mxu3 %v61_v44  ;;  %v1025_v44 = vld [vmem:[%s1093_s2] ss:$0 sm:$0xff] }
  0x29   :  { %670 = vmatpush.bf16.msrb.mxu3 %v1020_v41 }
  0x2a   :  { %632 = vmatpush.bf16.msrb.mxu0 %v995_v46 }
  0x2b   :  { %645 = vmatpush.bf16.msrb.mxu1 %v1003_v47 }
  0x2c   :  { %658 = vmatpush.bf16.msrb.mxu2 %v1011_v48 }
  0x2d   :  { %671 = vmatpush.bf16.msrb.mxu3 %v1019_v49 }
  0x2e   :  { %633 = vmatpush.bf16.msrb.mxu0 %v994_v50 }
  0x2f   :  { %646 = vmatpush.bf16.msrb.mxu1 %v1002_v51 }
  0x30   :  { %659 = vmatpush.bf16.msrb.mxu2 %v1010_v52 }
  0x31   :  { %672 = vmatpush.bf16.msrb.mxu3 %v1018_v53 }
  0x32   :  { %634 = vmatpush.bf16.msrb.mxu0 %v993_v54 }
  0x33   :  { %647 = vmatpush.bf16.msrb.mxu1 %v1001_v55 }
  0x34   :  { %660 = vmatpush.bf16.msrb.mxu2 %v1009_v56 }
  0x35   :  { %673 = vmatpush.bf16.msrb.mxu3 %v1017_v57 }
  0x36   :  { %635 = vmatpush.bf16.msrb.mxu0 %v992_v58 }
  0x37   :  { %648 = vmatpush.bf16.msrb.mxu1 %v1000_v59 }
  0x38   :  { %661 = vmatpush.bf16.msrb.mxu2 %v1008_v60 }
  0x39   :  { %674 = vmatpush.bf16.msrb.mxu3 %v1016_v61 }
  0x3a   :  { %636 = vmatpush.bf16.msrb.mxu0 %v991_v62 }
  0x3b   :  { %649 = vmatpush.bf16.msrb.mxu1 %v999_v63 }
  0x3c   :  { %662 = vmatpush.bf16.msrb.mxu2 %v1007_v0 }
  0x3d   :  { %675 = vmatpush.bf16.msrb.mxu3 %v1015_v1 }
  0x3e   :  { %637 = vmatpush.bf16.msrb.mxu0 %v990_v2 }
  0x3f   :  { %650 = vmatpush.bf16.msrb.mxu1 %v998_v3 }
  0x40   :  { %663 = vmatpush.bf16.msrb.mxu2 %v1006_v4 }
  0x41   :  { %676 = vmatpush.bf16.msrb.mxu3 %v1014_v5 }
  0x42   :  { %638 = vmatpush.bf16.msrb.mxu0 %v989_v6 }
  0x43   :  { %651 = vmatpush.bf16.msrb.mxu1 %v997_v7 }
  0x44   :  { %664 = vmatpush.bf16.msrb.mxu2 %v1005_v8 }
  0x45   :  { %677 = vmatpush.bf16.msrb.mxu3 %v1013_v9  ;;  %639 = vmatmul.bf16.vlgmr.msrb.gmra.mxu0 %v62_v14 }
  0x46   :  { %652 = vmatmul.bf16.vlgmr.msrb.gmra.mxu1 %v63_v15 }
  0x47   :  { %665 = vmatmul.bf16.vlgmr.msrb.gmra.mxu2 %v64_v16 }
  0x48   :  { %678 = vmatmul.bf16.vlgmr.msrb.gmra.mxu3 %v65_v17 }
  0xa2   :  { %v588_v18 = vpop.f32.mrf.mxu0 }
  0xa3   :  { %v601_v19 = vpop.f32.mrf.mxu1 }
  0xa4   :  { %v602_v27 = vadd.f32 %v601_v19, %v588_v18 }
  0xaa   :  { %v614_v21 = vpop.f32.mrf.mxu2  ;;  %v590_v23 = vpop.f32.mrf.mxu0 }
  0xab   :  { %v627_v22 = vpop.f32.mrf.mxu3  ;;  %v603_v24 = vpop.f32.mrf.mxu1  ;;  %v615_v28 = vadd.f32 %v614_v21, %v602_v27 }
  0xad   :  { %v628_v29 = vadd.f32 %v627_v22, %v615_v28 }
  0xb2   :  { %v616_v25 = vpop.f32.mrf.mxu2 }
  0xb3   :  { %v629_v26 = vpop.f32.mrf.mxu3 }
  0xc2   :  { %v640_v30 = vpop.f32.mrf.mxu0 }
  0xc3   :  { %v653_v31 = vpop.f32.mrf.mxu1  ;;  %v641_v32 = vadd.f32 %v640_v30, %v628_v29 }
  0xc5   :  { %v654_v33 = vadd.f32 %v653_v31, %v641_v32 }
  0xca   :  { %v666_v34 = vpop.f32.mrf.mxu2  ;;  %v642_v37 = vpop.f32.mrf.mxu0 }
  0xcb   :  { %v679_v35 = vpop.f32.mrf.mxu3  ;;  %v667_v36 = vadd.f32 %v666_v34, %v654_v33  ;;  %v655_v38 = vpop.f32.mrf.mxu1 }
  0xcd   :  { %v680_v40 = vadd.f32 %v679_v35, %v667_v36 }
  0xcf   :  { %v683_v41 = vadd.f32 %v680_v40, %v66_v39 }
  0xd1   :  { %684 = vst [vmem:[#allocation2] sm:$0x3] %v683_v41 }
  0xd2   :  { %v668_v42 = vpop.f32.mrf.mxu2 }
  0xd3   :  { %v681_v43 = vpop.f32.mrf.mxu3 }
  0xd8   :  { %v688_v45 = vld [vmem:[#allocation2] sm:$0x3] }
  0xd9   :  { %v693_v46 = vadd.f32 %v1025_v44, %v688_v45 }
  0xdb   :  { %v694_v47 = vmax.f32 %v693_v46, 0.0 }
  0xdd   :  { %695 = vst [vmem:[%s1094_s3] sm:$0x3] %v694_v47 }
  0xde   :  { %700 = vsyncpa [#allocation4], 1 }

</bundles_post_ra>
